<compile_context>
chip_gen: v7x
topology: tpu7x:2x2x1
jax: 0.10.0
libtpu: 0.0.40
codegen_flags: <defaults>
</compile_context>

<pallas_src>
import functools

import jax
import jax.numpy as jnp
from jax.experimental import pallas as pl
from jax.experimental.pallas import tpu as pltpu

H1 = 256            # first hidden width
H2 = 128            # second hidden width (trunk output)
HEAD_IN = H2 // 2   # each head reads 64 trunk features


def _round_up(x, m):
    return ((x + m - 1) // m) * m


def _policy_kernel(x_ref, w1_ref, b1_ref, w2_ref, b2_ref, wht_ref, bht_ref,
                   out_ref, *, action_dim):
    # Layer 1: Linear(state_dim, 256) + ReLU.  Cast input to bf16 in-kernel
    # (free VPU work hidden under the input DMA).
    x = x_ref[...].astype(jnp.bfloat16)
    h1 = jnp.dot(x, w1_ref[...], preferred_element_type=jnp.float32)
    h1 = jnp.maximum(h1 + b1_ref[...], 0.0)

    # Layer 2: Linear(256, 128) + ReLU.
    h2 = jnp.dot(h1.astype(jnp.bfloat16), w2_ref[...],
                 preferred_element_type=jnp.float32)
    h2 = jnp.maximum(h2 + b2_ref[...], 0.0)

    # Fused transposed heads: zt[r, b] = sum_k wht[r, k] * h2[b, k]
    # (A·Bᵀ contraction) -> (OUT_T, tm) with batch on the lane axis.
    zt = jax.lax.dot_general(
        wht_ref[...], h2.astype(jnp.bfloat16),
        dimension_numbers=(((1,), (1,)), ((), ())),
        preferred_element_type=jnp.float32)
    zt = zt + bht_ref[...]

    # exp only on the std sublane rows; inner where keeps exp() away from
    # large mean logits / padding rows (no spurious inf / FP flags).
    row = jax.lax.broadcasted_iota(jnp.int32, zt.shape, 0)
    is_std = jnp.logical_and(row >= action_dim, row < 2 * action_dim)
    out_ref[...] = jnp.where(is_std, jnp.exp(jnp.where(is_std, zt, 0.0)), zt)


def prepare_params(params):
    """One-time (per weight update) packing of kernel-ready parameters."""
    w_mean, w_std = params["w_mean"], params["w_std"]
    A = int(w_mean.shape[1])
    assert w_mean.shape[0] == HEAD_IN and w_std.shape[0] == H2 - HEAD_IN, (
        "head fan-in must match the 64/64 split of the 128-wide trunk")
    out_rows = _round_up(2 * A, 8)   # sublane-aligned packed output rows

    # Fused, transposed head weight: mean rows use trunk cols :64, std rows 64:.
    wht = jnp.zeros((out_rows, H2), jnp.float32)
    wht = wht.at[:A, :HEAD_IN].set(w_mean.T)
    wht = wht.at[A:2 * A, HEAD_IN:].set(w_std.T)
    bht = jnp.zeros((out_rows, 1), jnp.float32)
    bht = bht.at[:A, 0].set(params["b_mean"][0])
    bht = bht.at[A:2 * A, 0].set(params["b_std"][0])

    return {
        "action_dim": A,
        "out_rows": out_rows,
        "w1": params["w1"].astype(jnp.bfloat16),
        "b1": params["b1"].astype(jnp.float32),
        "w2": params["w2"].astype(jnp.bfloat16),
        "b2": params["b2"].astype(jnp.float32),
        "wht": wht.astype(jnp.bfloat16),
        "bht": bht,
        "temperature": params["temperature"],
        "alpha_mean": params["alpha_mean"],
        "alpha_cov": params["alpha_cov"],
    }


def policy_model_forward(states, prep, *, block_b=1024):
    """Policy_Model forward.

    Returns ((mean, std), temperature, (alpha_mean, alpha_cov)) like the PyTorch module.
    `prep` is the output of prepare_params().
    """
    B, S = states.shape
    A = prep["action_dim"]
    out_rows = prep["out_rows"]

    # Batch tile: multiple of 128 (lane-dense transposed output), >= 2 grid steps
    # whenever the batch allows it (v7x megacore), padding waste capped at tm-1.
    if B <= 128:
        tm = 128
    else:
        tm = min(block_b, _round_up((B + 1) // 2, 128))
    b_pad = _round_up(B, tm)

    x = states if b_pad == B else jnp.pad(states, ((0, b_pad - B), (0, 0)))

    grid = (b_pad // tm,)
    flops = 2 * b_pad * (S * H1 + H1 * H2 + H2 * out_rows)
    bytes_accessed = (x.size * 4 + prep["w1"].size * 2 + prep["w2"].size * 2
                      + prep["wht"].size * 2 + prep["b1"].size * 4
                      + prep["b2"].size * 4 + prep["bht"].size * 4
                      + out_rows * b_pad * 4)

    out_t = pl.pallas_call(
        functools.partial(_policy_kernel, action_dim=A),
        out_shape=jax.ShapeDtypeStruct((out_rows, b_pad), jnp.float32),
        grid_spec=pltpu.PrefetchScalarGridSpec(
            num_scalar_prefetch=0,
            grid=grid,
            in_specs=[
                pl.BlockSpec((tm, S), lambda i: (i, 0)),        # states: streamed
                pl.BlockSpec((S, H1), lambda i: (0, 0)),        # weights: VMEM-resident
                pl.BlockSpec((1, H1), lambda i: (0, 0)),
                pl.BlockSpec((H1, H2), lambda i: (0, 0)),
                pl.BlockSpec((1, H2), lambda i: (0, 0)),
                pl.BlockSpec((out_rows, H2), lambda i: (0, 0)),
                pl.BlockSpec((out_rows, 1), lambda i: (0, 0)),
            ],
            out_specs=pl.BlockSpec((out_rows, tm), lambda i: (0, i)),
        ),
        compiler_params=pltpu.CompilerParams(
            dimension_semantics=("parallel",)),
        cost_estimate=pl.CostEstimate(
            flops=flops,
            transcendentals=out_rows * b_pad,
            bytes_accessed=bytes_accessed),
    )(x, prep["w1"], prep["b1"], prep["w2"], prep["b2"],
      prep["wht"], prep["bht"])

    # Single contiguous slice of the tiny (2A, B) packed result, then split.
    packed = out_t[:2 * A, :B]
    mean = packed[:A, :].T
    std = packed[A:, :].T

    return ((mean, std), prep["temperature"],
            (prep["alpha_mean"], prep["alpha_cov"]))


def init_params(key, state_dim, action_dim):
    """Deterministic synthetic parameter init (PyTorch Linear-style uniform bounds)."""
    ks = jax.random.split(key, 8)

    def linear(kw, kb, fan_in, fan_out):
        bound = 1.0 / jnp.sqrt(jnp.float32(fan_in))
        w = jax.random.uniform(kw, (fan_in, fan_out), jnp.float32, -bound, bound)
        b = jax.random.uniform(kb, (1, fan_out), jnp.float32, -bound, bound)
        return w, b

    w1, b1 = linear(ks[0], ks[1], state_dim, H1)
    w2, b2 = linear(ks[2], ks[3], H1, H2)
    w_mean, b_mean = linear(ks[4], ks[5], HEAD_IN, action_dim)
    w_std, b_std = linear(ks[6], ks[7], H2 - HEAD_IN, action_dim)

    return {
        "w1": w1, "b1": b1,
        "w2": w2, "b2": b2,
        "w_mean": w_mean, "b_mean": b_mean,
        "w_std": w_std, "b_std": b_std,
        "temperature": jnp.array([1.0], jnp.float32),
        "alpha_mean": jnp.array([1.0], jnp.float32),
        "alpha_cov": jnp.array([1.0], jnp.float32),
    }


def _reference_forward(states, params):
    # TODO(synk): module name says TanhStdNN, but the spec's forward applies no tanh —
    # mean is linear and std = exp(linear), mirrored here exactly.
    h1 = jnp.maximum(states @ params["w1"] + params["b1"], 0.0)
    h2 = jnp.maximum(h1 @ params["w2"] + params["b2"], 0.0)
    mean = h2[:, :HEAD_IN] @ params["w_mean"] + params["b_mean"]
    std = jnp.exp(h2[:, HEAD_IN:] @ params["w_std"] + params["b_std"])
    return mean, std


if __name__ == "__main__":
    key = jax.random.PRNGKey(0)
    k_params, k_states, k_states2 = jax.random.split(key, 3)

    state_dim = 16
    action_dim = 4

    params = init_params(k_params, state_dim, action_dim)
    prep = prepare_params(params)   # hoisted once; forwards are just the pallas_call

    # --- case 1: small batch -----------------------------------------------------
    batch = 8
    states = jax.random.normal(k_states, (batch, state_dim), jnp.float32)
    (mean, std), temperature, (alpha_mean, alpha_cov) = policy_model_forward(states, prep)
    jax.block_until_ready((mean, std, temperature, alpha_mean, alpha_cov))

    mean_ref, std_ref = _reference_forward(states, params)
    assert mean.shape == (batch, action_dim) and std.shape == (batch, action_dim)
    # bf16 matmul operands (f32 accumulation) -> loose-but-meaningful tolerance.
    assert jnp.allclose(mean, mean_ref, atol=5e-2, rtol=5e-2)
    assert jnp.allclose(std, std_ref, atol=5e-2, rtol=5e-2)
    assert bool(jnp.all(std > 0.0))

    # --- case 2: ragged batch exercises the padding path --------------------------
    batch2 = 13
    states2 = jax.random.normal(k_states2, (batch2, state_dim), jnp.float32)
    (mean2, std2), _, _ = policy_model_forward(states2, prep)
    jax.block_until_ready((mean2, std2))
    mean2_ref, std2_ref = _reference_forward(states2, params)
    assert mean2.shape == (batch2, action_dim) and std2.shape == (batch2, action_dim)
    assert jnp.allclose(mean2, mean2_ref, atol=5e-2, rtol=5e-2)
    assert jnp.allclose(std2, std2_ref, atol=5e-2, rtol=5e-2)

    print("KERNEL_OK")
</pallas_src>

<mosaic_0001>
module attributes {stable_mosaic.version = 11 : i64} {
  func.func @_policy_kernel(%arg0: i32, %arg1: memref<128x16xf32, #tpu.memory_space<vmem>>, %arg2: memref<16x256xbf16, #tpu.memory_space<vmem>>, %arg3: memref<1x256xf32, #tpu.memory_space<vmem>>, %arg4: memref<256x128xbf16, #tpu.memory_space<vmem>>, %arg5: memref<1x128xf32, #tpu.memory_space<vmem>>, %arg6: memref<8x128xbf16, #tpu.memory_space<vmem>>, %arg7: memref<8x1xf32, #tpu.memory_space<vmem>>, %arg8: memref<8x128xf32, #tpu.memory_space<vmem>>) attributes {dimension_semantics = [#tpu.dimension_semantics<parallel>], iteration_bounds = array<i64: 1>, scalar_prefetch = 0 : i64, scratch_operands = 0 : i64, tpu.core_type = #tpu.core_type<tc>, window_params = [{transform_indices = @transform_0, window_bounds = array<i64: 128, 16>}, {pipeline_mode = #tpu.pipeline_mode<synchronous>, transform_indices = @transform_1, window_bounds = array<i64: 16, 256>}, {pipeline_mode = #tpu.pipeline_mode<synchronous>, transform_indices = @transform_2, window_bounds = array<i64: 1, 256>}, {pipeline_mode = #tpu.pipeline_mode<synchronous>, transform_indices = @transform_3, window_bounds = array<i64: 256, 128>}, {pipeline_mode = #tpu.pipeline_mode<synchronous>, transform_indices = @transform_4, window_bounds = array<i64: 1, 128>}, {pipeline_mode = #tpu.pipeline_mode<synchronous>, transform_indices = @transform_5, window_bounds = array<i64: 8, 128>}, {pipeline_mode = #tpu.pipeline_mode<synchronous>, transform_indices = @transform_6, window_bounds = array<i64: 8, 1>}, {transform_indices = @transform_7, window_bounds = array<i64: 8, 128>}]} {
    %c0 = arith.constant 0 : index
    %c0_0 = arith.constant 0 : index
    %0 = vector.load %arg1[%c0, %c0_0] : memref<128x16xf32, #tpu.memory_space<vmem>>, vector<128x16xf32>
    %1 = arith.truncf %0 : vector<128x16xf32> to vector<128x16xbf16>
    %c0_1 = arith.constant 0 : index
    %c0_2 = arith.constant 0 : index
    %2 = vector.load %arg2[%c0_1, %c0_2] : memref<16x256xbf16, #tpu.memory_space<vmem>>, vector<16x256xbf16>
    %cst = arith.constant dense<0.000000e+00> : vector<128x256xf32>
    %3 = tpu.matmul %1, %2, %cst {dimension_numbers = #tpu.dot_dimension_numbers<[1], [0], [0], [1], [0, 0, 1, 1], [], []>} : vector<128x16xbf16>, vector<16x256xbf16>, vector<128x256xf32> -> vector<128x256xf32>
    %c0_3 = arith.constant 0 : index
    %c0_4 = arith.constant 0 : index
    %4 = vector.load %arg3[%c0_3, %c0_4] : memref<1x256xf32, #tpu.memory_space<vmem>>, vector<1x256xf32>
    %5 = vector.broadcast %4 : vector<1x256xf32> to vector<128x256xf32>
    %6 = arith.addf %3, %5 : vector<128x256xf32>
    %cst_5 = arith.constant 0.000000e+00 : f32
    %7 = vector.broadcast %cst_5 : f32 to vector<128x256xf32>
    %8 = arith.maximumf %6, %7 : vector<128x256xf32>
    %9 = arith.truncf %8 : vector<128x256xf32> to vector<128x256xbf16>
    %c0_6 = arith.constant 0 : index
    %c0_7 = arith.constant 0 : index
    %10 = vector.load %arg4[%c0_6, %c0_7] : memref<256x128xbf16, #tpu.memory_space<vmem>>, vector<256x128xbf16>
    %cst_8 = arith.constant dense<0.000000e+00> : vector<128x128xf32>
    %11 = tpu.matmul %9, %10, %cst_8 {dimension_numbers = #tpu.dot_dimension_numbers<[1], [0], [0], [1], [0, 0, 1, 1], [], []>} : vector<128x256xbf16>, vector<256x128xbf16>, vector<128x128xf32> -> vector<128x128xf32>
    %c0_9 = arith.constant 0 : index
    %c0_10 = arith.constant 0 : index
    %12 = vector.load %arg5[%c0_9, %c0_10] : memref<1x128xf32, #tpu.memory_space<vmem>>, vector<1x128xf32>
    %13 = vector.broadcast %12 : vector<1x128xf32> to vector<128x128xf32>
    %14 = arith.addf %11, %13 : vector<128x128xf32>
    %cst_11 = arith.constant 0.000000e+00 : f32
    %15 = vector.broadcast %cst_11 : f32 to vector<128x128xf32>
    %16 = arith.maximumf %14, %15 : vector<128x128xf32>
    %c0_12 = arith.constant 0 : index
    %c0_13 = arith.constant 0 : index
    %17 = vector.load %arg6[%c0_12, %c0_13] : memref<8x128xbf16, #tpu.memory_space<vmem>>, vector<8x128xbf16>
    %18 = arith.truncf %16 : vector<128x128xf32> to vector<128x128xbf16>
    %cst_14 = arith.constant dense<0.000000e+00> : vector<8x128xf32>
    %19 = tpu.matmul %17, %18, %cst_14 {dimension_numbers = #tpu.dot_dimension_numbers<[1], [1], [0], [0], [0, 0, 1, 0], [], []>} : vector<8x128xbf16>, vector<128x128xbf16>, vector<8x128xf32> -> vector<8x128xf32>
    %c0_15 = arith.constant 0 : index
    %c0_16 = arith.constant 0 : index
    %20 = vector.load %arg7[%c0_15, %c0_16] : memref<8x1xf32, #tpu.memory_space<vmem>>, vector<8x1xf32>
    %21 = vector.broadcast %20 : vector<8x1xf32> to vector<8x128xf32>
    %22 = arith.addf %19, %21 : vector<8x128xf32>
    %23 = tpu.iota {dimensions = array<i32: 0>} : vector<8x128xi32>
    %c4_i32 = arith.constant 4 : i32
    %24 = vector.broadcast %c4_i32 : i32 to vector<8x128xi32>
    %25 = arith.cmpi sge, %23, %24 : vector<8x128xi32>
    %c8_i32 = arith.constant 8 : i32
    %26 = vector.broadcast %c8_i32 : i32 to vector<8x128xi32>
    %27 = arith.cmpi slt, %23, %26 : vector<8x128xi32>
    %28 = arith.andi %25, %27 : vector<8x128xi1>
    %cst_17 = arith.constant 0.000000e+00 : f32
    %29 = vector.broadcast %cst_17 : f32 to vector<8x128xf32>
    %30 = arith.select %28, %22, %29 : vector<8x128xi1>, vector<8x128xf32>
    %31 = math.exp %30 : vector<8x128xf32>
    %32 = arith.select %28, %31, %22 : vector<8x128xi1>, vector<8x128xf32>
    %c0_18 = arith.constant 0 : index
    %c0_19 = arith.constant 0 : index
    %33 = vector.load %arg8[%c0_18, %c0_19] : memref<8x128xf32, #tpu.memory_space<vmem>>, vector<8x128xf32>
    tpu.vector_store %arg8[%c0_18, %c0_19], %32 {strides = array<i32>} : memref<8x128xf32, #tpu.memory_space<vmem>>, vector<8x128xf32>,
    return
  }
  func.func @transform_0(%arg0: i32) -> (i32, i32) {
    %c0_i32 = arith.constant 0 : i32
    %c0_i32_0 = arith.constant 0 : i32
    return %arg0, %c0_i32 : i32, i32
  }
  func.func @transform_1(%arg0: i32) -> (i32, i32) {
    %c0_i32 = arith.constant 0 : i32
    %c0_i32_0 = arith.constant 0 : i32
    %c0_i32_1 = arith.constant 0 : i32
    return %c0_i32, %c0_i32_0 : i32, i32
  }
  func.func @transform_2(%arg0: i32) -> (i32, i32) {
    %c0_i32 = arith.constant 0 : i32
    %c0_i32_0 = arith.constant 0 : i32
    %c0_i32_1 = arith.constant 0 : i32
    return %c0_i32, %c0_i32_0 : i32, i32
  }
  func.func @transform_3(%arg0: i32) -> (i32, i32) {
    %c0_i32 = arith.constant 0 : i32
    %c0_i32_0 = arith.constant 0 : i32
    %c0_i32_1 = arith.constant 0 : i32
    return %c0_i32, %c0_i32_0 : i32, i32
  }
  func.func @transform_4(%arg0: i32) -> (i32, i32) {
    %c0_i32 = arith.constant 0 : i32
    %c0_i32_0 = arith.constant 0 : i32
    %c0_i32_1 = arith.constant 0 : i32
    return %c0_i32, %c0_i32_0 : i32, i32
  }
  func.func @transform_5(%arg0: i32) -> (i32, i32) {
    %c0_i32 = arith.constant 0 : i32
    %c0_i32_0 = arith.constant 0 : i32
    %c0_i32_1 = arith.constant 0 : i32
    return %c0_i32, %c0_i32_0 : i32, i32
  }
  func.func @transform_6(%arg0: i32) -> (i32, i32) {
    %c0_i32 = arith.constant 0 : i32
    %c0_i32_0 = arith.constant 0 : i32
    %c0_i32_1 = arith.constant 0 : i32
    return %c0_i32, %c0_i32_0 : i32, i32
  }
  func.func @transform_7(%arg0: i32) -> (i32, i32) {
    %c0_i32 = arith.constant 0 : i32
    %c0_i32_0 = arith.constant 0 : i32
    return %c0_i32, %arg0 : i32, i32
  }
}

</mosaic_0001>

<bundles_post_ra>
// kernel: tpu_custom_call.1
= control target key start
LH: loop header
LB: loop body
LE: loop exit
PB: predicated region body
PF: predicated region fallthrough
CT: control target
= control target key end

     0   :  { %v759_v2 = vmov 0   ;;  %vm76_vm0 = vcmask 130048   ;;  %s1014_s0 = inlined_call_operand.vmem [shape: f32[128,16], index: 0, kind: input, shape index: {}]   ;;  %s1015_s1 = inlined_call_operand.vmem [shape: bf16[16,256], index: 1, kind: input, shape index: {}]   ;;  %s1016_s2 = inlined_call_operand.vmem [shape: f32[1,256], index: 2, kind: input, shape index: {}]   ;;  %s1017_s3 = inlined_call_operand.vmem [shape: bf16[256,128], index: 3, kind: input, shape index: {}]   ;;  %s1018_s4 = inlined_call_operand.vmem [shape: f32[1,128], index: 4, kind: input, shape index: {}]   ;;  %s1019_s5 = inlined_call_operand.vmem [shape: bf16[8,128], index: 5, kind: input, shape index: {}]   ;;  %s1020_s6 = inlined_call_operand.vmem [shape: f32[8,1], index: 6, kind: input, shape index: {}]   ;;  %s1021_s7 = inlined_call_operand.hbm [shape: f32[8,128], index: 7, kind: output, shape index: {}]  }
   0x1   :  { %v714_v0 = vld [vmem:[%s1015_s1 + $0x4] ss:$8 sps:$4 sm:$0xff]   ;;  %v716_v1 = vld [vmem:[%s1015_s1] ss:$8 sps:$4 sm:$0xff]   ;;  %133 = vmatprep.mubr.bf16.mxu0 %v759_v2  ;;  %713 = vset.pattern.permute.xlu0 %v759_v2  ;;  %v30_v6 = vld [vmem:[%s1014_s0 + $0x10] sm:$0xff] }
   0x2   :  { %v28_v3 = vld [vmem:[%s1014_s0] sm:$0xff]  ;;  %v29_v4 = vld [vmem:[%s1014_s0 + $0x8] sm:$0xff]  ;;  %101 = vmatprep.subr.bf16.mxu0 %v714_v0  ;;  %v31_v7 = vld [vmem:[%s1014_s0 + $0x18] sm:$0xff] }
   0x3   :  { %v44_v5 = vpack.c.bf16 %v29_v4, %v28_v3  ;;  %102 = vmatpush1.bf16.msra.mxu0 %v716_v1  ;;  %v717_v8 = vld [vmem:[%s1017_s3 + $0x40] sm:$0xff]   ;;  %v719_v10 = vld [vmem:[%s1017_s3 + $0x48] sm:$0xff]   ;;  %v45_v11 = vpack.c.bf16 %v31_v7, %v30_v6  ;;  %v721_v13 = vld [vmem:[%s1017_s3 + $0x50] sm:$0xff]  }
   0x4   :  { %v718_v9 = vld [vmem:[%s1017_s3] sm:$0xff]   ;;  %616 = vmatprep.subr.bf16.mxu1 %v717_v8  ;;  %v720_v12 = vld [vmem:[%s1017_s3 + $0x8] sm:$0xff]   ;;  %v722_v16 = vld [vmem:[%s1017_s3 + $0x10] sm:$0xff]  }
   0x5   :  { %617 = vmatpush3.bf16.msra.mxu1 %v718_v9  ;;  %v32_v14 = vld [vmem:[%s1014_s0 + $0x20] sm:$0xff]  ;;  %v33_v15 = vld [vmem:[%s1014_s0 + $0x28] sm:$0xff]  ;;  %v723_v17 = vld [vmem:[%s1017_s3 + $0x58] sm:$0xff]  }
   0x6   :  { %591 = vmatmul.mubr.msk.bf16.vlgmr.msra.gmra.mrb[0].mxu0 %vm76_vm0, %v44_v5  ;;  %618 = vmatprep.subr.bf16.mxu1 %v719_v10  ;;  %v724_v18 = vld [vmem:[%s1017_s3 + $0x18] sm:$0xff]   ;;  %v725_v19 = vld [vmem:[%s1017_s3 + $0x60] sm:$0xff]   ;;  %v46_v20 = vpack.c.bf16 %v33_v15, %v32_v14 }
   0x7   :  { %143 = vmatprep.mubr.bf16.mxu0 %v759_v2 }
   0x9   :  { %619 = vmatpush3.bf16.msra.mxu1 %v720_v12 }
   0xa   :  { %620 = vmatprep.subr.bf16.mxu1 %v721_v13 }
   0xd   :  { %621 = vmatpush3.bf16.msra.mxu1 %v722_v16 }
   0xe   :  { %592 = vmatmul.mubr.msk.bf16.gmra.mrb[4].mxu0 %vm76_vm0, %v45_v11  ;;  %622 = vmatprep.subr.bf16.mxu1 %v723_v17 }
   0xf   :  { %153 = vmatprep.mubr.bf16.mxu0 %v759_v2 }
  0x10   :  { %12 = vsyncpa [#allocation3], 0  ;;  %v726_v21 = vld [vmem:[%s1017_s3 + $0x20] sm:$0xff]   ;;  %v34_v22 = vld [vmem:[%s1014_s0 + $0x30] sm:$0xff]  ;;  %v56_v43 = vlaneseq  ;;  %vm761_vm1 = vmmov 0   ;;  %s762_s23 = smov [#allocation2]  }
  0x11   :  { %623 = vmatpush3.bf16.msra.mxu1 %v724_v18  ;;  %v35_v23 = vld [vmem:[%s1014_s0 + $0x38] sm:$0xff]  ;;  %v727_v24 = vld [vmem:[%s1017_s3 + $0x68] sm:$0xff]   ;;  %v36_v26 = vld [vmem:[%s1014_s0 + $0x40] sm:$0xff]  ;;  %s581_s24 = sshll.u32 %s762_s23, 4  ;;  %s582_s24 = int_to_ptr.vmem [resolvable:$true] %s581_s24 }
  0x12   :  { %624 = vmatprep.subr.bf16.mxu1 %v725_v19  ;;  %v47_v25 = vpack.c.bf16 %v35_v23, %v34_v22  ;;  %v37_v27 = vld [vmem:[%s1014_s0 + $0x48] sm:$0xff]  ;;  %v38_v29 = vld [vmem:[%s1014_s0 + $0x50] sm:$0xff]  ;;  %v39_v30 = vld [vmem:[%s1014_s0 + $0x58] sm:$0xff]  ;;  %v922_v44 = vshrl.u32 %v56_v43, 7  ;;  %s735_s25 = scalar_lea.vmem %s582_s24, 128  ;;  %p740_p1 = scmp.lt.s32.totalorder %s582_s24, %s582_s24 }
  0x13   :  { %v48_v28 = vpack.c.bf16 %v37_v27, %v36_v26  ;;  %v49_v31 = vpack.c.bf16 %v39_v30, %v38_v29  ;;  %v40_v32 = vld [vmem:[%s1014_s0 + $0x60] sm:$0xff]  ;;  %v41_v33 = vld [vmem:[%s1014_s0 + $0x68] sm:$0xff]  ;;  %v42_v35 = vld [vmem:[%s1014_s0 + $0x70] sm:$0xff]  ;;  %p736_p0 = scmp.ne.s32.totalorder %s582_s24, %s735_s25  ;;  %p741_p2 = scmp.lt.s32.totalorder %s735_s25, %s735_s25 }
  0x14   :  { %v50_v34 = vpack.c.bf16 %v41_v33, %v40_v32  ;;  %v43_v36 = vld [vmem:[%s1014_s0 + $0x78] sm:$0xff]  ;;  %v728_v38 = vld [vmem:[%s1017_s3 + $0x28] sm:$0xff]   ;;  %v729_v39 = vld [vmem:[%s1017_s3 + $0x70] sm:$0xff]   ;;  %v58_v45 = vsub.s32 0, %v922_v44  ;;  %v62_v47 = vsub.s32 1, %v922_v44  ;;  %vm567_vm2 = vcmp.ge.s32.totalorder %v922_v44, 4 }
  0x15   :  { %625 = vmatpush3.bf16.msra.mxu1 %v726_v21  ;;  %v51_v37 = vpack.c.bf16 %v43_v36, %v42_v35  ;;  %v730_v40 = vld [vmem:[%s1017_s3 + $0x30] sm:$0xff]   ;;  %v731_v41 = vld [vmem:[%s1017_s3 + $0x78] sm:$0xff]   ;;  %v54_v46 = vld [vmem:[%s1016_s2] sm:$0x3]  ;;  %p742_p3 = por %p741_p2, %p740_p1 }
  0x16   :  { %593 = vmatmul.mubr.msk.bf16.gmra.mrb[8].mxu0 %vm76_vm0, %v46_v20  ;;  %626 = vmatprep.subr.bf16.mxu1 %v727_v24  ;;  %v732_v42 = vld [vmem:[%s1017_s3 + $0x38] sm:$0xff]   ;;  %v929_v48 = vrot.slane %v54_v46, %v58_v45  ;;  %v931_v49 = vrot.slane %v54_v46, %v62_v47 }
  0x17   :  { %163 = vmatprep.mubr.bf16.mxu0 %v759_v2  ;;  %p743_p4 = pnand %p742_p3, %p736_p0 }
  0x19   :  { %627 = vmatpush3.bf16.msra.mxu1 %v728_v38 }
  0x1a   :  { %628 = vmatprep.subr.bf16.mxu1 %v729_v39 }
  0x1d   :  { %629 = vmatpush3.bf16.msra.mxu1 %v730_v40 }
  0x1e   :  { %594 = vmatmul.mubr.msk.bf16.gmra.mrb[12].mxu0 %vm76_vm0, %v47_v25  ;;  %630 = vmatprep.subr.bf16.mxu1 %v731_v41 }
  0x1f   :  { %173 = vmatprep.mubr.bf16.mxu0 %v759_v2 }
  0x21   :  { %631 = vmatpush3.bf16.msra.mxu1 %v732_v42 }
  0x26   :  { %595 = vmatmul.mubr.msk.bf16.gmra.mrb[16].mxu0 %vm76_vm0, %v48_v28 }
  0x27   :  { %183 = vmatprep.mubr.bf16.mxu0 %v759_v2 }
  0x2e   :  { %596 = vmatmul.mubr.msk.bf16.gmra.mrb[20].mxu0 %vm76_vm0, %v49_v31 }
  0x2f   :  { %193 = vmatprep.mubr.bf16.mxu0 %v759_v2 }
  0x36   :  { %597 = vmatmul.mubr.msk.bf16.gmra.mrb[24].mxu0 %vm76_vm0, %v50_v34 }
  0x37   :  { %203 = vmatprep.mubr.bf16.mxu0 %v759_v2 }
  0x3e   :  { %598 = vmatmul.mubr.msk.bf16.gmra.mrb[28].mxu0 %vm76_vm0, %v51_v37 }
  0xd9   :  { %v135_v50 = vpop.f32.mrb[0].mxu0 }
  0xda   :  { %v136_v51 = vadd.f32 %v135_v50, %v929_v48  ;;  %v137_v52 = vpop.f32.mrb[1].mxu0 }
  0xdb   :  { %v138_v53 = vadd.f32 %v137_v52, %v931_v49  ;;  %v139_v54 = vpop.f32.mrb[2].mxu0 }
  0xdc   :  { %v140_v55 = vadd.f32 %v139_v54, %v929_v48  ;;  %v141_v56 = vpop.f32.mrb[3].mxu0  ;;  %v214_v58 = vmax.f32 %v136_v51, 0.0 }
  0xdd   :  { %v142_v57 = vadd.f32 %v141_v56, %v931_v49  ;;  %v215_v60 = vmax.f32 %v138_v53, 0.0 }
  0xde   :  { %v216_v59 = vmax.f32 %v140_v55, 0.0 }
  0xdf   :  { %v217_v61 = vmax.f32 %v142_v57, 0.0 }
  0xe0   :  { %v246_v62 = vpack.c.bf16 %v216_v59, %v214_v58 }
  0xe1   :  { %v145_v63 = vpop.f32.mrb[4].mxu0  ;;  %v247_v0 = vpack.c.bf16 %v217_v61, %v215_v60 }
  0xe2   :  { %v146_v1 = vadd.f32 %v145_v63, %v929_v48  ;;  %v147_v2 = vpop.f32.mrb[5].mxu0 }
  0xe3   :  { %v148_v3 = vadd.f32 %v147_v2, %v931_v49  ;;  %v149_v4 = vpop.f32.mrb[6].mxu0  ;;  %429 = vmatprep.mubr.bf16.mxu1 %v247_v0 }
  0xe4   :  { %v150_v5 = vadd.f32 %v149_v4, %v929_v48  ;;  %v151_v6 = vpop.f32.mrb[7].mxu0  ;;  %430 = vmatmul.mubr.bf16.vlgmr.msra.gmra.mrb[0].mxu1 %v246_v62  ;;  %v218_v8 = vmax.f32 %v146_v1, 0.0 }
  0xe5   :  { %v152_v7 = vadd.f32 %v151_v6, %v931_v49  ;;  %v219_v10 = vmax.f32 %v148_v3, 0.0 }
  0xe6   :  { %v220_v9 = vmax.f32 %v150_v5, 0.0 }
  0xe7   :  { %v221_v11 = vmax.f32 %v152_v7, 0.0 }
  0xe8   :  { %v248_v12 = vpack.c.bf16 %v220_v9, %v218_v8 }
  0xe9   :  { %v249_v13 = vpack.c.bf16 %v221_v11, %v219_v10  ;;  %v155_v14 = vpop.f32.mrb[8].mxu0 }
  0xea   :  { %v156_v15 = vadd.f32 %v155_v14, %v929_v48  ;;  %v157_v16 = vpop.f32.mrb[9].mxu0 }
  0xeb   :  { %v158_v17 = vadd.f32 %v157_v16, %v931_v49  ;;  %v159_v18 = vpop.f32.mrb[10].mxu0  ;;  %437 = vmatprep.mubr.bf16.mxu1 %v249_v13 }
  0xec   :  { %v160_v19 = vadd.f32 %v159_v18, %v929_v48  ;;  %v161_v20 = vpop.f32.mrb[11].mxu0  ;;  %438 = vmatmul.mubr.bf16.gmra.mrb[4].mxu1 %v248_v12  ;;  %v222_v22 = vmax.f32 %v156_v15, 0.0 }
  0xed   :  { %v162_v21 = vadd.f32 %v161_v20, %v931_v49  ;;  %v223_v24 = vmax.f32 %v158_v17, 0.0 }
  0xee   :  { %v224_v23 = vmax.f32 %v160_v19, 0.0 }
  0xef   :  { %v225_v25 = vmax.f32 %v162_v21, 0.0 }
  0xf0   :  { %v250_v26 = vpack.c.bf16 %v224_v23, %v222_v22 }
  0xf1   :  { %v251_v27 = vpack.c.bf16 %v225_v25, %v223_v24  ;;  %v165_v28 = vpop.f32.mrb[12].mxu0 }
  0xf2   :  { %v166_v29 = vadd.f32 %v165_v28, %v929_v48  ;;  %v167_v30 = vpop.f32.mrb[13].mxu0 }
  0xf3   :  { %v168_v31 = vadd.f32 %v167_v30, %v931_v49  ;;  %v169_v32 = vpop.f32.mrb[14].mxu0  ;;  %445 = vmatprep.mubr.bf16.mxu1 %v251_v27 }
  0xf4   :  { %v170_v33 = vadd.f32 %v169_v32, %v929_v48  ;;  %v171_v34 = vpop.f32.mrb[15].mxu0  ;;  %446 = vmatmul.mubr.bf16.gmra.mrb[8].mxu1 %v250_v26  ;;  %v226_v36 = vmax.f32 %v166_v29, 0.0 }
  0xf5   :  { %v172_v35 = vadd.f32 %v171_v34, %v931_v49  ;;  %v227_v38 = vmax.f32 %v168_v31, 0.0 }
  0xf6   :  { %v228_v37 = vmax.f32 %v170_v33, 0.0 }
  0xf7   :  { %v229_v39 = vmax.f32 %v172_v35, 0.0 }
  0xf8   :  { %v252_v40 = vpack.c.bf16 %v228_v37, %v226_v36  ;;  %v760_v37 = vmov 0.0  }
  0xf9   :  { %v253_v41 = vpack.c.bf16 %v229_v39, %v227_v38  ;;  %v175_v42 = vpop.f32.mrb[16].mxu0  ;;  %689 = vmatprep.subr.bf16.mxu0 %v760_v37  ;;  %705 = vmatprep.mubr.msk.bf16.mxu0 %vm761_vm1, %v760_v37  ;;  %v973_v38 = vld [vmem:[%s1018_s4] ss:$0 sm:$0xff] }
  0xfa   :  { %v176_v43 = vadd.f32 %v175_v42, %v929_v48  ;;  %v177_v45 = vpop.f32.mrb[17].mxu0 }
  0xfb   :  { %v178_v46 = vadd.f32 %v177_v45, %v931_v49  ;;  %v179_v47 = vpop.f32.mrb[18].mxu0  ;;  %453 = vmatprep.mubr.bf16.mxu1 %v253_v41 }
  0xfc   :  { %v180_v50 = vadd.f32 %v179_v47, %v929_v48  ;;  %v181_v51 = vpop.f32.mrb[19].mxu0  ;;  %454 = vmatmul.mubr.bf16.gmra.mrb[12].mxu1 %v252_v40  ;;  %v230_v53 = vmax.f32 %v176_v43, 0.0 }
  0xfd   :  { %v182_v52 = vadd.f32 %v181_v51, %v931_v49  ;;  %v231_v55 = vmax.f32 %v178_v46, 0.0 }
  0xfe   :  { %v232_v54 = vmax.f32 %v180_v50, 0.0 }
  0xff   :  { %v233_v56 = vmax.f32 %v182_v52, 0.0 }
 0x100   :  { %v254_v57 = vpack.c.bf16 %v232_v54, %v230_v53 }
 0x101   :  { %v255_v58 = vpack.c.bf16 %v233_v56, %v231_v55  ;;  %v185_v59 = vpop.f32.mrb[20].mxu0 }
 0x102   :  { %v186_v60 = vadd.f32 %v185_v59, %v929_v48  ;;  %v187_v61 = vpop.f32.mrb[21].mxu0 }
 0x103   :  { %v188_v62 = vadd.f32 %v187_v61, %v931_v49  ;;  %v189_v63 = vpop.f32.mrb[22].mxu0  ;;  %461 = vmatprep.mubr.bf16.mxu1 %v255_v58 }
 0x104   :  { %v190_v0 = vadd.f32 %v189_v63, %v929_v48  ;;  %v191_v1 = vpop.f32.mrb[23].mxu0  ;;  %462 = vmatmul.mubr.bf16.gmra.mrb[16].mxu1 %v254_v57  ;;  %v234_v3 = vmax.f32 %v186_v60, 0.0 }
 0x105   :  { %v192_v2 = vadd.f32 %v191_v1, %v931_v49  ;;  %v235_v5 = vmax.f32 %v188_v62, 0.0 }
 0x106   :  { %v236_v4 = vmax.f32 %v190_v0, 0.0 }
 0x107   :  { %v237_v6 = vmax.f32 %v192_v2, 0.0 }
 0x108   :  { %v256_v7 = vpack.c.bf16 %v236_v4, %v234_v3 }
 0x109   :  { %v257_v8 = vpack.c.bf16 %v237_v6, %v235_v5  ;;  %v195_v9 = vpop.f32.mrb[24].mxu0 }
 0x10a   :  { %v196_v10 = vadd.f32 %v195_v9, %v929_v48  ;;  %v197_v11 = vpop.f32.mrb[25].mxu0 }
 0x10b   :  { %v198_v12 = vadd.f32 %v197_v11, %v931_v49  ;;  %v199_v13 = vpop.f32.mrb[26].mxu0  ;;  %469 = vmatprep.mubr.bf16.mxu1 %v257_v8 }
 0x10c   :  { %v200_v14 = vadd.f32 %v199_v13, %v929_v48  ;;  %v201_v15 = vpop.f32.mrb[27].mxu0  ;;  %470 = vmatmul.mubr.bf16.gmra.mrb[20].mxu1 %v256_v7  ;;  %v238_v17 = vmax.f32 %v196_v10, 0.0 }
 0x10d   :  { %v202_v16 = vadd.f32 %v201_v15, %v931_v49  ;;  %v239_v19 = vmax.f32 %v198_v12, 0.0 }
 0x10e   :  { %v240_v18 = vmax.f32 %v200_v14, 0.0 }
 0x10f   :  { %v241_v20 = vmax.f32 %v202_v16, 0.0 }
 0x110   :  { %v258_v21 = vpack.c.bf16 %v240_v18, %v238_v17 }
 0x111   :  { %v259_v22 = vpack.c.bf16 %v241_v20, %v239_v19  ;;  %v205_v23 = vpop.f32.mrb[28].mxu0 }
 0x112   :  { %v206_v24 = vadd.f32 %v205_v23, %v929_v48  ;;  %v207_v25 = vpop.f32.mrb[29].mxu0 }
 0x113   :  { %v208_v26 = vadd.f32 %v207_v25, %v931_v49  ;;  %v209_v27 = vpop.f32.mrb[30].mxu0  ;;  %477 = vmatprep.mubr.bf16.mxu1 %v259_v22 }
 0x114   :  { %v210_v28 = vadd.f32 %v209_v27, %v929_v48  ;;  %v211_v29 = vpop.f32.mrb[31].mxu0  ;;  %478 = vmatmul.mubr.bf16.gmra.mrb[24].mxu1 %v258_v21  ;;  %v242_v31 = vmax.f32 %v206_v24, 0.0  ;;  %v519_v48 = vld [vmem:[%s1020_s6] sm:$0xff] }
 0x115   :  { %v212_v30 = vadd.f32 %v211_v29, %v931_v49  ;;  %v243_v33 = vmax.f32 %v208_v26, 0.0  ;;  %522 = vperm.xlu0 %713, %v519_v48  }
 0x116   :  { %v244_v32 = vmax.f32 %v210_v28, 0.0 }
 0x117   :  { %v245_v34 = vmax.f32 %v212_v30, 0.0 }
 0x118   :  { %v260_v35 = vpack.c.bf16 %v244_v32, %v242_v31 }
 0x119   :  { %v261_v36 = vpack.c.bf16 %v245_v34, %v243_v33 }
 0x11b   :  { %485 = vmatprep.mubr.bf16.mxu1 %v261_v36 }
 0x11c   :  { %486 = vmatmul.mubr.bf16.gmra.mrb[28].mxu1 %v260_v35 }
 0x1b7   :  { %v632_v49 = vpop.f32.mrb[0].mxu1 }
 0x1b8   :  { %v633_v39 = vpop.f32.mrb[1].mxu1 }
 0x1b9   :  { %v634_v40 = vadd.f32 %v633_v39, %v632_v49  ;;  %v635_v41 = vpop.f32.mrb[2].mxu1 }
 0x1ba   :  { %v636_v42 = vpop.f32.mrb[3].mxu1 }
 0x1bb   :  { %v432_v43 = vadd.f32 %v634_v40, %v973_v38  ;;  %v637_v45 = vadd.f32 %v636_v42, %v635_v41 }
 0x1bd   :  { %v435_v46 = vadd.f32 %v637_v45, %v973_v38  ;;  %v494_v47 = vmax.f32 %v432_v43, 0.0 }
 0x1bf   :  { %v495_v50 = vmax.f32 %v435_v46, 0.0  ;;  %v638_v51 = vpop.f32.mrb[4].mxu1 }
 0x1c0   :  { %v639_v52 = vpop.f32.mrb[5].mxu1 }
 0x1c1   :  { %v511_v53 = vpack.c.bf16 %v495_v50, %v494_v47  ;;  %v640_v54 = vadd.f32 %v639_v52, %v638_v51  ;;  %v641_v55 = vpop.f32.mrb[6].mxu1 }
 0x1c2   :  { %v642_v56 = vpop.f32.mrb[7].mxu1 }
 0x1c3   :  { %v440_v57 = vadd.f32 %v640_v54, %v973_v38  ;;  %v643_v58 = vadd.f32 %v642_v56, %v641_v55  ;;  %690 = vmatpush3.bf16.xpose.msra.mxu0 %v511_v53 }
 0x1c4   :  { %691 = vmatprep.subr.bf16.mxu0 %v760_v37 }
 0x1c5   :  { %v443_v59 = vadd.f32 %v643_v58, %v973_v38  ;;  %v496_v60 = vmax.f32 %v440_v57, 0.0 }
 0x1c7   :  { %v497_v61 = vmax.f32 %v443_v59, 0.0  ;;  %v644_v62 = vpop.f32.mrb[8].mxu1 }
 0x1c8   :  { %v645_v63 = vpop.f32.mrb[9].mxu1 }
 0x1c9   :  { %v512_v0 = vpack.c.bf16 %v497_v61, %v496_v60  ;;  %v646_v1 = vadd.f32 %v645_v63, %v644_v62  ;;  %v647_v2 = vpop.f32.mrb[10].mxu1 }
 0x1ca   :  { %v648_v3 = vpop.f32.mrb[11].mxu1 }
 0x1cb   :  { %v448_v4 = vadd.f32 %v646_v1, %v973_v38  ;;  %v649_v5 = vadd.f32 %v648_v3, %v647_v2  ;;  %692 = vmatpush3.bf16.xpose.msra.mxu0 %v512_v0 }
 0x1cc   :  { %693 = vmatprep.subr.bf16.mxu0 %v760_v37 }
 0x1cd   :  { %v451_v6 = vadd.f32 %v649_v5, %v973_v38  ;;  %v498_v7 = vmax.f32 %v448_v4, 0.0  ;;  %v510_v4 = vld [vmem:[%s1019_s5] sm:$0xf]  ;;  %v523_v5 = vpop.permute.xlu0 %522 }
 0x1cf   :  { %v499_v8 = vmax.f32 %v451_v6, 0.0  ;;  %v650_v9 = vpop.f32.mrb[12].mxu1 }
 0x1d0   :  { %v651_v10 = vpop.f32.mrb[13].mxu1 }
 0x1d1   :  { %v513_v11 = vpack.c.bf16 %v499_v8, %v498_v7  ;;  %v652_v12 = vadd.f32 %v651_v10, %v650_v9  ;;  %v653_v13 = vpop.f32.mrb[14].mxu1 }
 0x1d2   :  { %v654_v14 = vpop.f32.mrb[15].mxu1 }
 0x1d3   :  { %v456_v15 = vadd.f32 %v652_v12, %v973_v38  ;;  %v655_v16 = vadd.f32 %v654_v14, %v653_v13  ;;  %694 = vmatpush3.bf16.xpose.msra.mxu0 %v513_v11 }
 0x1d4   :  { %695 = vmatprep.subr.bf16.mxu0 %v760_v37 }
 0x1d5   :  { %v459_v17 = vadd.f32 %v655_v16, %v973_v38  ;;  %v500_v18 = vmax.f32 %v456_v15, 0.0 }
 0x1d7   :  { %v501_v19 = vmax.f32 %v459_v17, 0.0  ;;  %v656_v20 = vpop.f32.mrb[16].mxu1 }
 0x1d8   :  { %v657_v21 = vpop.f32.mrb[17].mxu1 }
 0x1d9   :  { %v514_v22 = vpack.c.bf16 %v501_v19, %v500_v18  ;;  %v658_v23 = vadd.f32 %v657_v21, %v656_v20  ;;  %v659_v24 = vpop.f32.mrb[18].mxu1 }
 0x1da   :  { %v660_v25 = vpop.f32.mrb[19].mxu1 }
 0x1db   :  { %v464_v26 = vadd.f32 %v658_v23, %v973_v38  ;;  %v661_v27 = vadd.f32 %v660_v25, %v659_v24  ;;  %696 = vmatpush3.bf16.xpose.msra.mxu0 %v514_v22 }
 0x1dc   :  { %697 = vmatprep.subr.bf16.mxu0 %v760_v37 }
 0x1dd   :  { %v467_v28 = vadd.f32 %v661_v27, %v973_v38  ;;  %v502_v29 = vmax.f32 %v464_v26, 0.0 }
 0x1df   :  { %v503_v30 = vmax.f32 %v467_v28, 0.0  ;;  %v662_v31 = vpop.f32.mrb[20].mxu1 }
 0x1e0   :  { %v663_v32 = vpop.f32.mrb[21].mxu1 }
 0x1e1   :  { %v515_v33 = vpack.c.bf16 %v503_v30, %v502_v29  ;;  %v664_v34 = vadd.f32 %v663_v32, %v662_v31  ;;  %v665_v35 = vpop.f32.mrb[22].mxu1 }
 0x1e2   :  { %v666_v36 = vpop.f32.mrb[23].mxu1 }
 0x1e3   :  { %v472_v48 = vadd.f32 %v664_v34, %v973_v38  ;;  %v667_v49 = vadd.f32 %v666_v36, %v665_v35  ;;  %698 = vmatpush3.bf16.xpose.msra.mxu0 %v515_v33 }
 0x1e4   :  { %699 = vmatprep.subr.bf16.mxu0 %v760_v37 }
 0x1e5   :  { %v475_v39 = vadd.f32 %v667_v49, %v973_v38  ;;  %v504_v40 = vmax.f32 %v472_v48, 0.0 }
 0x1e7   :  { %v505_v41 = vmax.f32 %v475_v39, 0.0  ;;  %v668_v42 = vpop.f32.mrb[24].mxu1 }
 0x1e8   :  { %v669_v43 = vpop.f32.mrb[25].mxu1 }
 0x1e9   :  { %v516_v45 = vpack.c.bf16 %v505_v41, %v504_v40  ;;  %v670_v46 = vadd.f32 %v669_v43, %v668_v42  ;;  %v671_v47 = vpop.f32.mrb[26].mxu1 }
 0x1ea   :  { %v672_v50 = vpop.f32.mrb[27].mxu1 }
 0x1eb   :  { %v480_v51 = vadd.f32 %v670_v46, %v973_v38  ;;  %v673_v52 = vadd.f32 %v672_v50, %v671_v47  ;;  %700 = vmatpush3.bf16.xpose.msra.mxu0 %v516_v45 }
 0x1ec   :  { %701 = vmatprep.subr.bf16.mxu0 %v760_v37 }
 0x1ed   :  { %v483_v53 = vadd.f32 %v673_v52, %v973_v38  ;;  %v506_v54 = vmax.f32 %v480_v51, 0.0 }
 0x1ef   :  { %v507_v55 = vmax.f32 %v483_v53, 0.0  ;;  %v674_v56 = vpop.f32.mrb[28].mxu1 }
 0x1f0   :  { %v675_v57 = vpop.f32.mrb[29].mxu1 }
 0x1f1   :  { %v517_v58 = vpack.c.bf16 %v507_v55, %v506_v54  ;;  %v676_v59 = vadd.f32 %v675_v57, %v674_v56  ;;  %v677_v60 = vpop.f32.mrb[30].mxu1 }
 0x1f2   :  { %v678_v61 = vpop.f32.mrb[31].mxu1 }
 0x1f3   :  { %v488_v62 = vadd.f32 %v676_v59, %v973_v38  ;;  %v679_v63 = vadd.f32 %v678_v61, %v677_v60  ;;  %702 = vmatpush3.bf16.xpose.msra.mxu0 %v517_v58 }
 0x1f4   :  { %703 = vmatprep.subr.bf16.mxu0 %v760_v37 }
 0x1f5   :  { %v491_v0 = vadd.f32 %v679_v63, %v973_v38  ;;  %v508_v1 = vmax.f32 %v488_v62, 0.0 }
 0x1f7   :  { %v509_v2 = vmax.f32 %v491_v0, 0.0 }
 0x1f9   :  { %v518_v3 = vpack.c.bf16 %v509_v2, %v508_v1 }
 0x1fb   :  { %704 = vmatpush3.bf16.xpose.msra.mxu0 %v518_v3 }
 0x202   :  { %706 = vmatmul.mubr.bf16.vlgmr.msra.gmra.mrb[32].mxu0 %v510_v4 }
 0x2d5   :  { %v559_v6 = vpop.f32.mrb[32].mxu0 }
 0x2d6   :  { %v560_v7 = vadd.f32 %v559_v6, %v523_v5  ;;  %v707_v8 = vpop.f32.mrb[33].mxu0 }
 0x2d7   :  { %v562_v9 = vpop.f32.mrb[34].mxu0 }
 0x2d8   :  { %v570_v10 = vsel %vm567_vm2, %v560_v7, 0.0  ;;  %v708_v37 = vpop.f32.mrb[35].mxu0 }
 0x2d9   :  { %v571_v11 = vmul.f32 1.442695, %v570_v10 }
 0x2db   :  { %733 = vpow2.f32 %v571_v11 }
 0x2e5   :  { %v734_v38 = vpop.eup %733 }
 0x2e6   :  { %v573_v12 = vsel %vm567_vm2, %v734_v38, %v560_v7 }
 0x2e7   :  { %574 = vst [vmem:[#allocation2] sm:$0xff] %v573_v12 }
 0x2e8   :  { %746 = shalt.err (!%p743_p4)
}
 0x2e9   :  { %s747_s27 = scalar_lea.hbm %s1021_s7, 128 }
 0x2ea   :  { %p748_p5 = scmp.ne.s32.totalorder %s1021_s7, %s747_s27  ;;  %p751_p6 = scmp.lt.u32.totalorder %s747_s27, %s1021_s7 }
 0x2ec   :  { %p753_p7 = pnand %p751_p6, %p748_p5 }
 0x2ee   :  { %756 = shalt.err (!%p753_p7)
}
 0x2ef   :  { %584 = dma.vmem_to_hbm [thread:$0]  %s582_s24, 128, %s1021_s7, [#allocation3]  }
 0x2f0   :  { %757 = dma.done.wait [#allocation3], 128  }
 0x2f1   :  { %758 = vsyncadd [#allocation3], 4294967168 }
 0x2f2   :  { %588 = vsyncpa [#allocation3], 1 }

</bundles_post_ra>
